<compile_context>
chip_gen: v5e
topology: v5e:2x2
jax: 0.10.0
libtpu: 0.0.40
codegen_flags: <defaults>
</compile_context>

<pallas_src>
import functools
import re

import jax
import jax.numpy as jnp
from jax.experimental import pallas as pl
from jax.experimental.pallas import tpu as pltpu

ALPHA = 0.2        # LeakyReLU negative slope
BN_EPS = 1e-5      # BatchNorm1d default eps


def _tpu_generation():
    """Best-effort TPU generation (4, 5, 6, 7, ...) from device_kind; 0 if unknown."""
    try:
        kind = jax.devices()[0].device_kind.lower()
    except Exception:
        return 0
    m = re.search(r"v(\d+)", kind)
    return int(m.group(1)) if m else 0


def _vmem_limit_bytes(gen):
    if gen >= 7:
        return 48 * 1024 * 1024      # v7x: 64 MiB physical per TC -> leave headroom
    if gen >= 4:
        return 64 * 1024 * 1024      # v4/v5e/v6e: 128 MiB physical
    return 32 * 1024 * 1024          # unknown: conservative default


def project_kernel(x_ref, w_ref, na_ref, h_ref, ns_ref):
    """Row-tile projection: h = x @ W^T (stored bf16) and negated attention partials ns = h @ [-a1|-a2]."""
    h = jnp.dot(x_ref[...], w_ref[...], preferred_element_type=jnp.float32)      # [TM, Dout] f32
    h_ref[...] = h.astype(jnp.bfloat16)                                          # bf16 store (half DMA)
    ns_ref[...] = jnp.dot(h, na_ref[...], preferred_element_type=jnp.float32)    # [TM, 2] = [-a1.h | -a2.h]


def aggregate_kernel(ns1_ref, ns2t_ref, adj_ref, h_ref, nnorm_ref,
                     bn_scale_ref, bn_shift_ref, out_ref,
                     acc_ref, rowsum_ref, *, tile_k, h_resident):
    """Masked attention aggregation over the neighbor (j) reduction axis + fused epilogue."""
    j = pl.program_id(1)

    @pl.when(j == 0)
    def _init():
        acc_ref[...] = jnp.zeros_like(acc_ref)
        rowsum_ref[...] = jnp.zeros_like(rowsum_ref)

    # scores_n[i, jj] = -(a1.h[i] + a2.h[jj]); runs in bf16 on v6e/v7x (wrapper picks dtype), f32 on v5e.
    scores_n = ns1_ref[...] + ns2t_ref[...]                       # [TM, TK]
    # -leaky_relu(s) = min(-s, alpha*(-s))  -> mul+min (2 VALU ops/edge) instead of cmp+mul+sel+neg
    neg_lrelu = jnp.minimum(scores_n, ALPHA * scores_n)
    # select (don't multiply) under the int8 adjacency mask: no inf*0 NaN, no f32 mask stream
    edge_e = jnp.where(adj_ref[...] != 0, jnp.exp(neg_lrelu), 0.0)

    rowsum_ref[...] += jnp.sum(edge_e, axis=1, keepdims=True, dtype=jnp.float32)   # [TM, 1] f32

    if h_resident:
        # whole h stays VMEM-resident for the entire grid; slice the current neighbor tile
        h_tile = h_ref[pl.ds(pl.multiple_of(j * tile_k, tile_k), tile_k), :]
    else:
        h_tile = h_ref[...]
    # bf16 MXU inputs, f32 accumulation in VMEM scratch
    acc_ref[...] += jnp.dot(edge_e.astype(jnp.bfloat16), h_tile,
                            preferred_element_type=jnp.float32)                   # [TM, Dout]

    @pl.when(j == pl.num_programs(1) - 1)
    def _finalize():
        inv = pl.reciprocal(rowsum_ref[...], approx=True)       # EUP slot, ~free
        scale = inv * nnorm_ref[...]                            # fold 1/rowsum with graph_norm
        hp = acc_ref[...] * scale
        hp = hp * bn_scale_ref[...] + bn_shift_ref[...]         # folded BatchNorm (eval)
        out_ref[...] = jnp.where(hp > 0, hp, jnp.expm1(hp))     # ELU; dropout = identity in eval


def gat_head_forward(x, w_t, a1, a2, adj, n_norm, gamma, beta, run_mean, run_var,
                     *, tile_m=256, tile_k=2048):
    """Full GATHeadLayer forward (eval mode).

    adj: [N, N] adjacency (adj[i, j] != 0 iff COO edge (edge[0]=i, edge[1]=j)); cast to int8.
    NOTE: like the PyTorch module, a node with no in-edges (rowsum == 0) produces inf/NaN.
    """
    N, Din = x.shape
    Dout = w_t.shape[1]

    gen = _tpu_generation()
    vmem_limit = _vmem_limit_bytes(gen)
    # bf16 elementwise score/exp chain only where the VPU/EUP are bf16-native (v6e/v7x)
    score_dtype = jnp.bfloat16 if gen >= 6 else jnp.float32

    tile_m = min(tile_m, N)
    tile_k = min(tile_k, N)
    # keep >= 2 row tiles so the "parallel" axis can shard across v7x's 2 TensorCores
    if N // tile_m < 2:
        half = tile_m // 2
        if half >= 16 and N % half == 0:
            tile_m = half
    assert N % tile_m == 0 and N % tile_k == 0, "N must be divisible by tile_m and tile_k"

    if adj.dtype != jnp.int8:
        adj = (adj != 0).astype(jnp.int8)           # 4x less HBM/VMEM than f32 mask
    n_norm = n_norm.reshape(N, 1).astype(jnp.float32)
    gamma = gamma.reshape(1, Dout)
    beta = beta.reshape(1, Dout)
    run_mean = run_mean.reshape(1, Dout)
    run_var = run_var.reshape(1, Dout)

    # ---- Kernel A: fc + (negated) attention partials, hoisted out of the O(N^2) loop ----
    neg_a_cat = -jnp.concatenate([a1, a2], axis=1)                  # [Dout, 2]; negation folded into weight
    h, neg_s = pl.pallas_call(
        project_kernel,
        out_shape=(jax.ShapeDtypeStruct((N, Dout), jnp.bfloat16),   # h emitted directly as bf16
                   jax.ShapeDtypeStruct((N, 2), jnp.float32)),
        grid=(N // tile_m,),
        in_specs=[pl.BlockSpec((tile_m, Din), lambda i: (i, 0)),
                  pl.BlockSpec((Din, Dout), lambda i: (0, 0)),
                  pl.BlockSpec((Dout, 2), lambda i: (0, 0))],
        out_specs=[pl.BlockSpec((tile_m, Dout), lambda i: (i, 0)),
                   pl.BlockSpec((tile_m, 2), lambda i: (i, 0))],
        compiler_params=pltpu.CompilerParams(
            dimension_semantics=("parallel",),
            vmem_limit_bytes=vmem_limit),
    )(x, w_t, neg_a_cat)

    ns1 = neg_s[:, 0:1].astype(score_dtype)          # [N, 1]  -a1.h[i]   (O(N), cheap)
    ns2t = neg_s[:, 1].reshape(1, N).astype(score_dtype)   # [1, N]  -a2.h[j]

    # Fold eval-mode BatchNorm into one scale + one shift vector (host-side constants)
    bn_scale = gamma * jax.lax.rsqrt(run_var + BN_EPS)              # [1, Dout]
    bn_shift = beta - run_mean * bn_scale                           # [1, Dout]

    # Keep h fully VMEM-resident (DMA'd once, constant block index) when it comfortably fits;
    # otherwise stream the (tile_k, Dout) neighbor tile per grid step.
    h_resident = (2 * N * Dout * 2) <= ((8 << 20) if gen >= 7 else (16 << 20))
    h_spec = (pl.BlockSpec((N, Dout), lambda i, j: (0, 0)) if h_resident
              else pl.BlockSpec((tile_k, Dout), lambda i, j: (j, 0)))

    # ---- Kernel B: tiled masked attention aggregation + fused epilogue ----
    out = pl.pallas_call(
        functools.partial(aggregate_kernel, tile_k=tile_k, h_resident=h_resident),
        out_shape=jax.ShapeDtypeStruct((N, Dout), jnp.float32),
        grid=(N // tile_m, N // tile_k),
        in_specs=[
            pl.BlockSpec((tile_m, 1), lambda i, j: (i, 0)),         # -s1
            pl.BlockSpec((1, tile_k), lambda i, j: (0, j)),         # -s2^T
            pl.BlockSpec((tile_m, tile_k), lambda i, j: (i, j)),    # adj (int8)
            h_spec,                                                 # h (bf16)
            pl.BlockSpec((tile_m, 1), lambda i, j: (i, 0)),         # n_norm
            pl.BlockSpec((1, Dout), lambda i, j: (0, 0)),           # bn_scale
            pl.BlockSpec((1, Dout), lambda i, j: (0, 0)),           # bn_shift
        ],
        out_specs=pl.BlockSpec((tile_m, Dout), lambda i, j: (i, 0)),
        scratch_shapes=[pltpu.VMEM((tile_m, Dout), jnp.float32),    # acc
                        pltpu.VMEM((tile_m, 1), jnp.float32)],      # rowsum
        compiler_params=pltpu.CompilerParams(
            dimension_semantics=("parallel", "arbitrary"),          # j = reduction axis, last in grid
            vmem_limit_bytes=vmem_limit),
    )(ns1, ns2t, adj, h, n_norm, bn_scale, bn_shift)
    return out


def reference_forward(x, w_t, a1, a2, adj, n_norm, gamma, beta, run_mean, run_var):
    h = x @ w_t
    scores = (h @ a1) + (h @ a2).T
    lrelu = jnp.where(scores > 0, scores, ALPHA * scores)
    e = jnp.where(adj != 0, jnp.exp(-lrelu), 0.0)
    rowsum = e.sum(axis=1, keepdims=True)
    hp = (e @ h) / rowsum
    hp = hp * n_norm
    hp = (hp - run_mean) / jnp.sqrt(run_var + BN_EPS) * gamma + beta
    return jnp.where(hp > 0, hp, jnp.expm1(hp))


if __name__ == "__main__":
    # Single head (multi-head fusion would stack heads along the feature dim so the aggregation
    # matmul is >=256 wide on v6e/v7x). Dout=128 keeps output stores lane-dense.
    N, Din, Dout, E = 512, 128, 128, 4096

    key = jax.random.PRNGKey(0)
    ks = jax.random.split(key, 10)

    x = jax.random.normal(ks[0], (N, Din), dtype=jnp.float32)

    # sparse support -> int8 adjacency (COO row = edge[0], col = edge[1]); self-loops keep
    # every rowsum > 0 (matches the PyTorch module's implicit requirement).
    src = jax.random.randint(ks[1], (E,), 0, N)
    dst = jax.random.randint(ks[2], (E,), 0, N)
    adj = jnp.zeros((N, N), jnp.int8).at[src, dst].set(1)
    adj = adj.at[jnp.arange(N), jnp.arange(N)].set(1)

    n_norm = jax.random.uniform(ks[3], (N, 1), minval=0.5, maxval=1.5, dtype=jnp.float32)

    # parameters (module zero-inits fc/attn_fc; small random values keep the path non-degenerate)
    w_t = 0.1 * jax.random.normal(ks[4], (Din, Dout), dtype=jnp.float32)        # fc.weight.T
    a_full = 0.1 * jax.random.normal(ks[5], (1, 2 * Dout), dtype=jnp.float32)   # attn_fc.weight
    a1 = a_full[:, :Dout].T                                                     # [Dout, 1]
    a2 = a_full[:, Dout:].T                                                     # [Dout, 1]

    # BatchNorm1d(Dout) parameters / running stats (eval mode)
    gamma = jax.random.uniform(ks[6], (1, Dout), minval=0.5, maxval=1.5, dtype=jnp.float32)
    beta = 0.1 * jax.random.normal(ks[7], (1, Dout), dtype=jnp.float32)
    run_mean = 0.1 * jax.random.normal(ks[8], (1, Dout), dtype=jnp.float32)
    run_var = jax.random.uniform(ks[9], (1, Dout), minval=0.5, maxval=1.5, dtype=jnp.float32)

    # Small tiles here so the (4, 2) grid exercises the accumulator / reduction path; production
    # defaults (tile_m=256, tile_k=2048) are used when shapes allow.
    out = gat_head_forward(x, w_t, a1, a2, adj, n_norm, gamma, beta, run_mean, run_var,
                           tile_m=128, tile_k=256)
    out = jax.block_until_ready(out)

    ref = reference_forward(x, w_t, a1, a2, adj, n_norm, gamma, beta, run_mean, run_var)
    assert out.shape == (N, Dout)
    assert jnp.all(jnp.isfinite(out))
    # bf16 MXU + (on v6e/v7x) bf16 score/exp chain + approx reciprocal -> looser tolerance there
    tol = 4e-2 if _tpu_generation() >= 6 else 2e-2
    assert jnp.allclose(out, ref, rtol=tol, atol=tol), "Pallas kernel mismatch vs reference"

    print("KERNEL_OK")
</pallas_src>

<mosaic_0001>
module attributes {stable_mosaic.version = 11 : i64} {
  func.func @project_kernel(%arg0: i32, %arg1: memref<128x128xf32, #tpu.memory_space<vmem>>, %arg2: memref<128x128xf32, #tpu.memory_space<vmem>>, %arg3: memref<128x2xf32, #tpu.memory_space<vmem>>, %arg4: memref<128x128xbf16, #tpu.memory_space<vmem>>, %arg5: memref<128x2xf32, #tpu.memory_space<vmem>>) attributes {dimension_semantics = [#tpu.dimension_semantics<parallel>], iteration_bounds = array<i64: 4>, scalar_prefetch = 0 : i64, scratch_operands = 0 : i64, tpu.core_type = #tpu.core_type<tc>, window_params = [{transform_indices = @transform_0, window_bounds = array<i64: 128, 128>}, {pipeline_mode = #tpu.pipeline_mode<synchronous>, transform_indices = @transform_1, window_bounds = array<i64: 128, 128>}, {pipeline_mode = #tpu.pipeline_mode<synchronous>, transform_indices = @transform_2, window_bounds = array<i64: 128, 2>}, {transform_indices = @transform_3, window_bounds = array<i64: 128, 128>}, {transform_indices = @transform_4, window_bounds = array<i64: 128, 2>}]} {
    %c0 = arith.constant 0 : index
    %c0_0 = arith.constant 0 : index
    %0 = vector.load %arg1[%c0, %c0_0] : memref<128x128xf32, #tpu.memory_space<vmem>>, vector<128x128xf32>
    %c0_1 = arith.constant 0 : index
    %c0_2 = arith.constant 0 : index
    %1 = vector.load %arg2[%c0_1, %c0_2] : memref<128x128xf32, #tpu.memory_space<vmem>>, vector<128x128xf32>
    %cst = arith.constant dense<0.000000e+00> : vector<128x128xf32>
    %2 = tpu.matmul %0, %1, %cst {dimension_numbers = #tpu.dot_dimension_numbers<[1], [0], [0], [1], [0, 0, 1, 1], [], []>} : vector<128x128xf32>, vector<128x128xf32>, vector<128x128xf32> -> vector<128x128xf32>
    %3 = arith.truncf %2 : vector<128x128xf32> to vector<128x128xbf16>
    %c0_3 = arith.constant 0 : index
    %c0_4 = arith.constant 0 : index
    %4 = vector.load %arg4[%c0_3, %c0_4] : memref<128x128xbf16, #tpu.memory_space<vmem>>, vector<128x128xbf16>
    tpu.vector_store %arg4[%c0_3, %c0_4], %3 {strides = array<i32>} : memref<128x128xbf16, #tpu.memory_space<vmem>>, vector<128x128xbf16>,
    %c0_5 = arith.constant 0 : index
    %c0_6 = arith.constant 0 : index
    %5 = vector.load %arg3[%c0_5, %c0_6] : memref<128x2xf32, #tpu.memory_space<vmem>>, vector<128x2xf32>
    %cst_7 = arith.constant dense<0.000000e+00> : vector<128x2xf32>
    %6 = tpu.matmul %2, %5, %cst_7 {dimension_numbers = #tpu.dot_dimension_numbers<[1], [0], [0], [1], [0, 0, 1, 1], [], []>} : vector<128x128xf32>, vector<128x2xf32>, vector<128x2xf32> -> vector<128x2xf32>
    %c0_8 = arith.constant 0 : index
    %c0_9 = arith.constant 0 : index
    %7 = vector.load %arg5[%c0_8, %c0_9] : memref<128x2xf32, #tpu.memory_space<vmem>>, vector<128x2xf32>
    tpu.vector_store %arg5[%c0_8, %c0_9], %6 {strides = array<i32>} : memref<128x2xf32, #tpu.memory_space<vmem>>, vector<128x2xf32>,
    return
  }
  func.func @transform_0(%arg0: i32) -> (i32, i32) {
    %c0_i32 = arith.constant 0 : i32
    %c0_i32_0 = arith.constant 0 : i32
    return %arg0, %c0_i32 : i32, i32
  }
  func.func @transform_1(%arg0: i32) -> (i32, i32) {
    %c0_i32 = arith.constant 0 : i32
    %c0_i32_0 = arith.constant 0 : i32
    %c0_i32_1 = arith.constant 0 : i32
    return %c0_i32, %c0_i32_0 : i32, i32
  }
  func.func @transform_2(%arg0: i32) -> (i32, i32) {
    %c0_i32 = arith.constant 0 : i32
    %c0_i32_0 = arith.constant 0 : i32
    %c0_i32_1 = arith.constant 0 : i32
    return %c0_i32, %c0_i32_0 : i32, i32
  }
  func.func @transform_3(%arg0: i32) -> (i32, i32) {
    %c0_i32 = arith.constant 0 : i32
    %c0_i32_0 = arith.constant 0 : i32
    return %arg0, %c0_i32 : i32, i32
  }
  func.func @transform_4(%arg0: i32) -> (i32, i32) {
    %c0_i32 = arith.constant 0 : i32
    %c0_i32_0 = arith.constant 0 : i32
    return %arg0, %c0_i32 : i32, i32
  }
}

</mosaic_0001>

<bundles_post_ra>
// kernel: tpu_custom_call.1
= control target key start
LH: loop header
LB: loop body
LE: loop exit
PB: predicated region body
PF: predicated region fallthrough
CT: control target
= control target key end

     0   :  { %10 = vsyncpa [#allocation3], 0  ;;  %s1147_s0 = inlined_call_operand.hbm [shape: f32[512,128], index: 0, kind: input, shape index: {}]   ;;  %s1148_s1 = inlined_call_operand.vmem [shape: f32[128,128], index: 1, kind: input, shape index: {}]   ;;  %s1149_s2 = inlined_call_operand.vmem [shape: f32[128,2], index: 2, kind: input, shape index: {}]   ;;  %s1150_s3 = inlined_call_operand.hbm [shape: bf16[512,128], index: 3, kind: output, shape index: {0}]   ;;  %s1151_s4 = inlined_call_operand.vmem [shape: f32[512,2], index: 4, kind: output, shape index: {1}]  }
   0x1   :  { %12 = vsyncpa [#allocation3 + $0x1], 0 }
   0x2   :  { %13 = vsyncpa [#allocation4], 0 }
   0x3   :  { %15 = vsyncpa [#allocation4 + $0x1], 0  ;;  %s858_s15 = smov 0   ;;  %s860_s16 = smov 0  }
   0x4   :  { %s862_s17 = smov 0   ;;  %s864_s18 = smov 0  }
   0x5 LB: > { %s879_s19 = sadd.s32 4294967295, %s827_s18   ;;  %s584_s20 = sadd.s32 4294967294, %s827_s18   ;;  %s827_s18 = sphi %s864_s18, %s1160_s18   ;;  %s823_s17 = sphi %s862_s17, %s1159_s17   ;;  %s819_s16 = sphi %s860_s16, %s1158_s16   ;;  %s815_s15 = sphi %s858_s15, %s1157_s15  }
   0x6   : > { %s883_s21 = sadd.s32 1, %s827_s18   ;;  %s28_s22 = sadd.s32 1, %s823_s17 }
   0x7   : > { %s25_s23 = ssub.s32 %s827_s18, %s883_s21  ;;  %p35_p0 = scmp.ne.s32.totalorder %s823_s17, %s819_s16 }
   0x8   : > { %p26_p1 = scmp.eq.s32.totalorder %s25_s23, 0  ;;  %p36_p2 = scmp.eq.s32.totalorder %s827_s18, 0 }
   0x9   : > { %p41_p3 = scmp.ne.s32.totalorder %s819_s16, %s815_s15  ;;  %p42_p4 = scmp.eq.s32.totalorder %s879_s19, 0 }
   0xa   : > { %s895_s24 = scalar_select %p26_p1, %s823_s17, %s28_s22  }
   0xb   : > { %p897_p5 = por %p36_p2, %p35_p0  ;;  %p901_p6 = por %p42_p4, %p41_p3 }
   0xc   : > { %p107_p7 = scmp.eq.s32.totalorder %s879_s19, 3  ;;  %p113_p8 = scmp.eq.s32.totalorder %s584_s20, 3 }
   0xd   : > { %p693_p9 = scmp.lt.s32.totalorder %s827_s18, 4  ;;  %s165_s29 = sand.u32 1, %s823_s17  }
   0xe   : > { %p907_p10 = por %p107_p7, %p35_p0  ;;  %p911_p11 = por %p113_p8, %p41_p3 }
   0xf   : > { %s600_s30 = sshll.u32 %s827_s18, 7  ;;  %s587_s5 = sshll.u32 %s165_s29, 7 }
  0x10   : > { %s174_s8 = scalar_lea.hbm %s1147_s0, %s600_s30  ;;  %s169_s10 = scalar_lea.vmem [#allocation2], %s587_s5 }
  0x11   : > { %s175_s9 = sshll.u32 %s174_s8, 4  ;;  %s177_s11 = sshll.u32 %s169_s10, 4  ;;  %s176_s9 = int_to_ptr.hbm [resolvable:$true] %s175_s9  ;;  %s178_s11 = int_to_ptr.vmem [resolvable:$true] %s177_s11 }
  0x12   : > { %p922_p12 = pnand %p693_p9, %p897_p5  ;;  %p590_p13 = scmp.ge.s32.totalorder %s827_s18, 1 }
  0x13   : > { %p185_p0 = scmp.lt.s32.totalorder %s827_s18, 5  ;;  %s166_s13 = scalar_lea.sflag [#allocation3], %s165_s29 }
  0x14   : > { %s731_s14 = sshra.s32 %s176_s9, 4  ;;  %p735_p2 = pneg %p922_p12  ;;  %s732_s14 = int_to_ptr.hbm [resolvable:$true] %s731_s14 }
  0x15   : > { %s733_s20 = scalar_lea.hbm %s732_s14, 128  ;;  %s738_s25 = scalar_lea.hbm %s1147_s0, 512 }
  0x16   : > { %p734_p1 = scmp.ne.s32.totalorder %s732_s14, %s733_s20  ;;  %p739_p5 = scmp.lt.s32.totalorder %s732_s14, %s1147_s0 }
  0x17   : > { %p740_p7 = scmp.lt.s32.totalorder %s738_s25, %s733_s20 }
  0x18   : > { %p736_p3 = pnand %p735_p2, %p734_p1 }
  0x19   : > { %p741_p8 = por %p740_p7, %p739_p5 }
  0x1a   : > { %p737_p4 = pneg %p736_p3 }
  0x1c   : > { %p742_p9 = pnand %p741_p8, %p737_p4 }
  0x1e   : > { %745 = shalt.err (!%p742_p9)
}
  0x1f   : > { %s829_s29 = smov 128   ;;  %s830_s6 = smov 8  }
  0x20   : > { %688 = dma.hbm_to_vmem [thread:$0]  (!%p922_p12), %s176_s9, 2048, %s178_s11, %s166_s13, %s829_s29, %s829_s29, %s830_s6  }
  0x21   : > { %p186_p1 = pnand %p590_p13, %p185_p0 }
  0x22   : > { %s943_s7 = sand.u32 (!%p186_p1), 1, %s819_s16  }
  0x23   : > { %189 = sbr.rel (%p186_p1) target bundleno = 394 (0x18a), region = 32  ;;  %s591_s8 = sshll.u32 (!%p186_p1), %s943_s7, 7 }
  0x24   : > { %s192_s10 = scalar_lea.sflag (!%p186_p1), [#allocation3], %s943_s7  ;;  %s947_s14 = scalar_lea.vmem (!%p186_p1), [#allocation2], %s591_s8 }
  0x28   : > { %806 = dma.done.wait (%p901_p6), %s192_s10, 2048  }
  0x29   : > { %808 = vsyncadd (%p901_p6), %s192_s10, 4294965248  ;;  %v265_v0 = vld [vmem:[%s1148_s1 + $0x78] sm:$0xff]  ;;  %v264_v1 = vld [vmem:[%s1148_s1 + $0x70] sm:$0xff]  ;;  %s592_s20 = sshll.u32 %s943_s7, 6  ;;  %s601_s23 = sshll.u32 %s879_s19, 6 }
  0x2a   : > { %649 = vmatpush.msra.mxu2 %v265_v0  ;;  %266 = vmatpush.msra.mxu0 %v265_v0  ;;  %v263_v2 = vld [vmem:[%s1148_s1 + $0x68] sm:$0xff]  ;;  %v262_v3 = vld [vmem:[%s1148_s1 + $0x60] sm:$0xff]  ;;  %v261_v4 = vld [vmem:[%s1148_s1 + $0x58] sm:$0xff]  ;;  %s478_s30 = scalar_lea.hbm %s1150_s3, %s601_s23  ;;  %s462_s29 = scalar_lea.sflag [#allocation4], %s943_s7 }
  0x2b   : > { %v260_v5 = vld [vmem:[%s1148_s1 + $0x50] sm:$0xff]  ;;  %v259_v6 = vld [vmem:[%s1148_s1 + $0x48] sm:$0xff]  ;;  %v258_v7 = vld [vmem:[%s1148_s1 + $0x40] sm:$0xff]  ;;  %s481_s5 = sshll.u32 %s478_s30, 4  ;;  %s781_s11 = scalar_lea.hbm %s1150_s3, 256  ;;  %s482_s5 = int_to_ptr.hbm [resolvable:$true] %s481_s5 }
  0x2c   : > { %650 = vmatpush.msra.mxu2 %v264_v1  ;;  %267 = vmatpush.msra.mxu0 %v264_v1  ;;  %v257_v8 = vld [vmem:[%s1148_s1 + $0x38] sm:$0xff]  ;;  %v256_v9 = vld [vmem:[%s1148_s1 + $0x30] sm:$0xff]  ;;  %v255_v10 = vld [vmem:[%s1148_s1 + $0x28] sm:$0xff]  ;;  %s775_s6 = sshra.s32 %s482_s5, 4  ;;  %s776_s6 = int_to_ptr.hbm [resolvable:$true] %s775_s6 }
  0x2d   : > { %v254_v11 = vld [vmem:[%s1148_s1 + $0x20] sm:$0xff]  ;;  %v253_v12 = vld [vmem:[%s1148_s1 + $0x18] sm:$0xff]  ;;  %v252_v13 = vld [vmem:[%s1148_s1 + $0x10] sm:$0xff]  ;;  %s777_s8 = scalar_lea.hbm %s776_s6, 64  ;;  %p782_p0 = scmp.lt.s32.totalorder %s776_s6, %s1150_s3 }
  0x2e   : > { %651 = vmatpush.msra.mxu2 %v263_v2  ;;  %268 = vmatpush.msra.mxu0 %v263_v2  ;;  %v251_v14 = vld [vmem:[%s1148_s1 + $0x8] sm:$0xff]  ;;  %v250_v15 = vld [vmem:[%s1148_s1] sm:$0xff]  ;;  %v244_v20 = vld [vmem:[%s947_s14 + $0x50] sm:$0xff]  ;;  %p778_p6 = scmp.ne.s32.totalorder %s776_s6, %s777_s8  ;;  %p783_p2 = scmp.lt.s32.totalorder %s781_s11, %s777_s8 }
  0x2f   : > { %v242_v16 = vld [vmem:[%s947_s14 + $0x40] sm:$0xff]  ;;  %v243_v18 = vld [vmem:[%s947_s14 + $0x48] sm:$0xff]  ;;  %v236_v21 = vld [vmem:[%s947_s14 + $0x10] sm:$0xff] }
  0x30   : > { %652 = vmatpush.msra.mxu2 %v262_v3  ;;  %269 = vmatpush.msra.mxu0 %v262_v3  ;;  %v234_v17 = vld [vmem:[%s947_s14] sm:$0xff]  ;;  %v235_v19 = vld [vmem:[%s947_s14 + $0x8] sm:$0xff]  ;;  %v245_v22 = vld [vmem:[%s947_s14 + $0x58] sm:$0xff]  ;;  %p779_p12 = pnand %p778_p6, %p907_p10  ;;  %p784_p3 = por %p783_p2, %p782_p0 }
  0x31   : > { %v237_v23 = vld [vmem:[%s947_s14 + $0x18] sm:$0xff]  ;;  %v377_v25 = vld [vmem:[%s1149_s2 + $0x70] sm:$0xff]  ;;  %v376_v26 = vld [vmem:[%s1149_s2 + $0x68] sm:$0xff] }
  0x32   : > { %653 = vmatpush.msra.mxu2 %v261_v4  ;;  %270 = vmatpush.msra.mxu0 %v261_v4  ;;  %v378_v24 = vld [vmem:[%s1149_s2 + $0x78] sm:$0xff]  ;;  %v375_v27 = vld [vmem:[%s1149_s2 + $0x60] sm:$0xff]  ;;  %v373_v31 = vld [vmem:[%s1149_s2 + $0x50] sm:$0xff]  ;;  %p780_p13 = pneg %p779_p12 }
  0x33   : > { %665 = vmatpush.msra.mxu3 %v378_v24  ;;  %379 = vmatpush.msra.mxu1 %v378_v24  ;;  %v246_v28 = vld [vmem:[%s947_s14 + $0x60] sm:$0xff]  ;;  %v374_v30 = vld [vmem:[%s1149_s2 + $0x58] sm:$0xff]  ;;  %v372_v32 = vld [vmem:[%s1149_s2 + $0x48] sm:$0xff] }
  0x34   : > { %654 = vmatpush.msra.mxu2 %v260_v5  ;;  %271 = vmatpush.msra.mxu0 %v260_v5  ;;  %v238_v29 = vld [vmem:[%s947_s14 + $0x20] sm:$0xff]  ;;  %v247_v34 = vld [vmem:[%s947_s14 + $0x68] sm:$0xff]  ;;  %v370_v36 = vld [vmem:[%s1149_s2 + $0x38] sm:$0xff]  ;;  %p785_p4 = pnand %p784_p3, %p780_p13 }
  0x35   : > { %666 = vmatpush.msra.mxu3 %v377_v25  ;;  %380 = vmatpush.msra.mxu1 %v377_v25  ;;  %v371_v33 = vld [vmem:[%s1149_s2 + $0x40] sm:$0xff]  ;;  %v239_v35 = vld [vmem:[%s947_s14 + $0x28] sm:$0xff]  ;;  %v369_v37 = vld [vmem:[%s1149_s2 + $0x30] sm:$0xff] }
  0x36   : > { %655 = vmatpush.msra.mxu2 %v259_v6  ;;  %272 = vmatpush.msra.mxu0 %v259_v6  ;;  %v368_v38 = vld [vmem:[%s1149_s2 + $0x28] sm:$0xff]  ;;  %v367_v39 = vld [vmem:[%s1149_s2 + $0x20] sm:$0xff]  ;;  %v248_v40 = vld [vmem:[%s947_s14 + $0x70] sm:$0xff] }
  0x37   : > { %667 = vmatpush.msra.mxu3 %v376_v26  ;;  %381 = vmatpush.msra.mxu1 %v376_v26  ;;  %v240_v41 = vld [vmem:[%s947_s14 + $0x30] sm:$0xff]  ;;  %v366_v42 = vld [vmem:[%s1149_s2 + $0x18] sm:$0xff]  ;;  %v364_v46 = vld [vmem:[%s1149_s2 + $0x8] sm:$0xff] }
  0x38   : > { %656 = vmatpush.msra.mxu2 %v258_v7  ;;  %273 = vmatpush.msra.mxu0 %v258_v7  ;;  %v365_v43 = vld [vmem:[%s1149_s2 + $0x10] sm:$0xff]  ;;  %v249_v44 = vld [vmem:[%s947_s14 + $0x78] sm:$0xff]  ;;  %v363_v47 = vld [vmem:[%s1149_s2] sm:$0xff] }
  0x39   : > { %668 = vmatpush.msra.mxu3 %v375_v27  ;;  %382 = vmatpush.msra.mxu1 %v375_v27  ;;  %v241_v45 = vld [vmem:[%s947_s14 + $0x38] sm:$0xff]  ;;  %s1066_s14 = scalar_lea.vmem [#allocation5], %s592_s20 }
  0x3a   : > { %657 = vmatpush.msra.mxu2 %v257_v8  ;;  %274 = vmatpush.msra.mxu0 %v257_v8  ;;  %s479_s22 = sshll.u32 %s1066_s14, 4  ;;  %s480_s22 = int_to_ptr.vmem [resolvable:$true] %s479_s22 }
  0x3b   : > { %669 = vmatpush.msra.mxu3 %v374_v30  ;;  %383 = vmatpush.msra.mxu1 %v374_v30 }
  0x3c   : > { %658 = vmatpush.msra.mxu2 %v256_v9  ;;  %275 = vmatpush.msra.mxu0 %v256_v9 }
  0x3d   : > { %670 = vmatpush.msra.mxu3 %v373_v31  ;;  %384 = vmatpush.msra.mxu1 %v373_v31 }
  0x3e   : > { %659 = vmatpush.msra.mxu2 %v255_v10  ;;  %276 = vmatpush.msra.mxu0 %v255_v10 }
  0x3f   : > { %671 = vmatpush.msra.mxu3 %v372_v32  ;;  %385 = vmatpush.msra.mxu1 %v372_v32 }
  0x40   : > { %660 = vmatpush.msra.mxu2 %v254_v11  ;;  %277 = vmatpush.msra.mxu0 %v254_v11 }
  0x41   : > { %672 = vmatpush.msra.mxu3 %v371_v33  ;;  %386 = vmatpush.msra.mxu1 %v371_v33 }
  0x42   : > { %661 = vmatpush.msra.mxu2 %v253_v12  ;;  %278 = vmatpush.msra.mxu0 %v253_v12 }
  0x43   : > { %673 = vmatpush.msra.mxu3 %v370_v36  ;;  %387 = vmatpush.msra.mxu1 %v370_v36 }
  0x44   : > { %662 = vmatpush.msra.mxu2 %v252_v13  ;;  %279 = vmatpush.msra.mxu0 %v252_v13 }
  0x45   : > { %674 = vmatpush.msra.mxu3 %v369_v37  ;;  %388 = vmatpush.msra.mxu1 %v369_v37 }
  0x46   : > { %663 = vmatpush.msra.mxu2 %v251_v14  ;;  %280 = vmatpush.msra.mxu0 %v251_v14 }
  0x47   : > { %675 = vmatpush.msra.mxu3 %v368_v38  ;;  %389 = vmatpush.msra.mxu1 %v368_v38 }
  0x48   : > { %664 = vmatpush.msra.mxu2 %v250_v15  ;;  %281 = vmatpush.msra.mxu0 %v250_v15 }
  0x49   : > { %306 = vmatmul.f32.vlgmr.msra.gmra.mxu2 %v242_v16  ;;  %282 = vmatmul.f32.vlgmr.msra.gmra.mxu0 %v234_v17 }
  0x4a   : > { %676 = vmatpush.msra.mxu3 %v367_v39  ;;  %390 = vmatpush.msra.mxu1 %v367_v39 }
  0x4c   : > { %677 = vmatpush.msra.mxu3 %v366_v42  ;;  %391 = vmatpush.msra.mxu1 %v366_v42 }
  0x4e   : > { %678 = vmatpush.msra.mxu3 %v365_v43  ;;  %392 = vmatpush.msra.mxu1 %v365_v43 }
  0x50   : > { %679 = vmatpush.msra.mxu3 %v364_v46  ;;  %393 = vmatpush.msra.mxu1 %v364_v46 }
  0x51   : > { %309 = vmatmul.f32.gmra.mxu2 %v243_v18  ;;  %285 = vmatmul.f32.gmra.mxu0 %v235_v19 }
  0x52   : > { %680 = vmatpush.msra.mxu3 %v363_v47  ;;  %394 = vmatpush.msra.mxu1 %v363_v47 }
  0x59   : > { %312 = vmatmul.f32.gmra.mxu2 %v244_v20  ;;  %288 = vmatmul.f32.gmra.mxu0 %v236_v21 }
  0x61   : > { %315 = vmatmul.f32.gmra.mxu2 %v245_v22  ;;  %291 = vmatmul.f32.gmra.mxu0 %v237_v23 }
  0x69   : > { %318 = vmatmul.f32.gmra.mxu2 %v246_v28  ;;  %294 = vmatmul.f32.gmra.mxu0 %v238_v29 }
  0x71   : > { %321 = vmatmul.f32.gmra.mxu2 %v247_v34  ;;  %297 = vmatmul.f32.gmra.mxu0 %v239_v35 }
  0x79   : > { %324 = vmatmul.f32.gmra.mxu2 %v248_v40  ;;  %300 = vmatmul.f32.gmra.mxu0 %v240_v41 }
  0x81   : > { %327 = vmatmul.f32.gmra.mxu2 %v249_v44  ;;  %303 = vmatmul.f32.gmra.mxu0 %v241_v45 }
  0xc6   : > { %v283_v48 = vpop.f32.mrf.mxu0 }
  0xc7   : > { %395 = vmatmul.f32.vlgmr.msra.gmra.mxu1 %v283_v48 }
  0xcc   : > { %v307_v49 = vpop.f32.mrf.mxu2 }
  0xcd   : > { %419 = vmatmul.f32.vlgmr.msra.gmra.mxu3 %v307_v49 }
  0xce   : > { %v286_v50 = vpop.f32.mrf.mxu0 }
  0xcf   : > { %v605_v51 = vpack.c.bf16 %v286_v50, %v283_v48  ;;  %398 = vmatmul.f32.gmra.mxu1 %v286_v50 }
  0xd1   : > { %606 = vst [vmem:[%s1066_s14] sm:$0xff] %v605_v51  }
  0xd4   : > { %v310_v52 = vpop.f32.mrf.mxu2 }
  0xd5   : > { %v625_v53 = vpack.c.bf16 %v310_v52, %v307_v49  ;;  %422 = vmatmul.f32.gmra.mxu3 %v310_v52 }
  0xd6   : > { %v289_v54 = vpop.f32.mrf.mxu0 }
  0xd7   : > { %645 = vst [vmem:[%s1066_s14 + $0x20] sm:$0xff] %v625_v53   ;;  %401 = vmatmul.f32.gmra.mxu1 %v289_v54 }
  0xdc   : > { %v313_v55 = vpop.f32.mrf.mxu2 }
  0xdd   : > { %425 = vmatmul.f32.gmra.mxu3 %v313_v55 }
  0xde   : > { %v292_v56 = vpop.f32.mrf.mxu0 }
  0xdf   : > { %v610_v57 = vpack.c.bf16 %v292_v56, %v289_v54  ;;  %404 = vmatmul.f32.gmra.mxu1 %v292_v56 }
  0xe1   : > { %642 = vst [vmem:[%s1066_s14 + $0x8] sm:$0xff] %v610_v57  }
  0xe4   : > { %v316_v58 = vpop.f32.mrf.mxu2 }
  0xe5   : > { %v630_v59 = vpack.c.bf16 %v316_v58, %v313_v55  ;;  %428 = vmatmul.f32.gmra.mxu3 %v316_v58 }
  0xe6   : > { %v295_v60 = vpop.f32.mrf.mxu0 }
  0xe7   : > { %646 = vst [vmem:[%s1066_s14 + $0x28] sm:$0xff] %v630_v59   ;;  %407 = vmatmul.f32.gmra.mxu1 %v295_v60 }
  0xec   : > { %v319_v61 = vpop.f32.mrf.mxu2 }
  0xed   : > { %431 = vmatmul.f32.gmra.mxu3 %v319_v61 }
  0xee   : > { %v298_v62 = vpop.f32.mrf.mxu0 }
  0xef   : > { %v615_v63 = vpack.c.bf16 %v298_v62, %v295_v60  ;;  %410 = vmatmul.f32.gmra.mxu1 %v298_v62 }
  0xf1   : > { %643 = vst [vmem:[%s1066_s14 + $0x10] sm:$0xff] %v615_v63  }
  0xf4   : > { %v322_v0 = vpop.f32.mrf.mxu2 }
  0xf5   : > { %v635_v1 = vpack.c.bf16 %v322_v0, %v319_v61  ;;  %434 = vmatmul.f32.gmra.mxu3 %v322_v0 }
  0xf6   : > { %v301_v2 = vpop.f32.mrf.mxu0 }
  0xf7   : > { %647 = vst [vmem:[%s1066_s14 + $0x30] sm:$0xff] %v635_v1   ;;  %413 = vmatmul.f32.gmra.mxu1 %v301_v2 }
  0xfc   : > { %v325_v3 = vpop.f32.mrf.mxu2 }
  0xfd   : > { %437 = vmatmul.f32.gmra.mxu3 %v325_v3 }
  0xfe   : > { %v304_v4 = vpop.f32.mrf.mxu0 }
  0xff   : > { %v620_v5 = vpack.c.bf16 %v304_v4, %v301_v2  ;;  %416 = vmatmul.f32.gmra.mxu1 %v304_v4 }
 0x101   : > { %644 = vst [vmem:[%s1066_s14 + $0x18] sm:$0xff] %v620_v5  }
 0x104   : > { %v328_v6 = vpop.f32.mrf.mxu2 }
 0x105   : > { %v640_v7 = vpack.c.bf16 %v328_v6, %v325_v3  ;;  %440 = vmatmul.f32.gmra.mxu3 %v328_v6 }
 0x107   : > { %648 = vst [vmem:[%s1066_s14 + $0x38] sm:$0xff] %v640_v7  }
 0x108   : > { %788 = shalt.err (!%p785_p4)
}
 0x109   : > { %s831_s7 = smov 64   ;;  %s832_s20 = smov 4   ;;  %vm444_vm0 = vcmask 15360  }
 0x10a   : > { %683 = dma.vmem_to_hbm [thread:$0]  (%p907_p10), %s480_s22, 1024, %s482_s5, %s462_s29, %s831_s7, %s831_s7, %s832_s20  }
 0x10b   : > { %s593_s14 = sshll.u32 %s879_s19, 4 }
 0x10c   : > { %p229_p5 = scmp.lt.s32.totalorder %s593_s14, 63 }
 0x10e   : > { %s1162_s14 = smov (!%p229_p5, %s593_s14), 63 }
 0x10f   : > { %s594_s23 = sshll.u32 %s1162_s14, 3 }
 0x110   : > { %s1096_s30 = scalar_lea.vmem %s1151_s4, %s594_s23 }
 0x144   : > { %v396_v8 = vpop.f32.mrf.mxu1 }
 0x145   : > { %445 = vst.msk [vmem:[%s1096_s30] sm:$0xff] %vm444_vm0, %v396_v8 }
 0x14c   : > { %v399_v9 = vpop.f32.mrf.mxu1 }
 0x14d   : > { %446 = vst.msk [vmem:[%s1096_s30 + $0x8] sm:$0xff] %vm444_vm0, %v399_v9 }
 0x150   : > { %v420_v10 = vpop.f32.mrf.mxu3 }
 0x151   : > { %453 = vst.msk [vmem:[%s1096_s30 + $0x40] sm:$0xff] %vm444_vm0, %v420_v10 }
 0x154   : > { %v402_v11 = vpop.f32.mrf.mxu1 }
 0x155   : > { %447 = vst.msk [vmem:[%s1096_s30 + $0x10] sm:$0xff] %vm444_vm0, %v402_v11 }
 0x158   : > { %v423_v12 = vpop.f32.mrf.mxu3 }
 0x159   : > { %454 = vst.msk [vmem:[%s1096_s30 + $0x48] sm:$0xff] %vm444_vm0, %v423_v12 }
 0x15c   : > { %v405_v13 = vpop.f32.mrf.mxu1 }
 0x15d   : > { %448 = vst.msk [vmem:[%s1096_s30 + $0x18] sm:$0xff] %vm444_vm0, %v405_v13 }
 0x160   : > { %v426_v14 = vpop.f32.mrf.mxu3 }
 0x161   : > { %455 = vst.msk [vmem:[%s1096_s30 + $0x50] sm:$0xff] %vm444_vm0, %v426_v14 }
 0x164   : > { %v408_v15 = vpop.f32.mrf.mxu1 }
 0x165   : > { %449 = vst.msk [vmem:[%s1096_s30 + $0x20] sm:$0xff] %vm444_vm0, %v408_v15 }
 0x168   : > { %v429_v16 = vpop.f32.mrf.mxu3 }
 0x169   : > { %456 = vst.msk [vmem:[%s1096_s30 + $0x58] sm:$0xff] %vm444_vm0, %v429_v16 }
 0x16c   : > { %v411_v17 = vpop.f32.mrf.mxu1 }
 0x16d   : > { %450 = vst.msk [vmem:[%s1096_s30 + $0x28] sm:$0xff] %vm444_vm0, %v411_v17 }
 0x170   : > { %v432_v18 = vpop.f32.mrf.mxu3 }
 0x171   : > { %457 = vst.msk [vmem:[%s1096_s30 + $0x60] sm:$0xff] %vm444_vm0, %v432_v18 }
 0x174   : > { %v414_v19 = vpop.f32.mrf.mxu1 }
 0x175   : > { %451 = vst.msk [vmem:[%s1096_s30 + $0x30] sm:$0xff] %vm444_vm0, %v414_v19 }
 0x178   : > { %v435_v20 = vpop.f32.mrf.mxu3 }
 0x179   : > { %458 = vst.msk [vmem:[%s1096_s30 + $0x68] sm:$0xff] %vm444_vm0, %v435_v20 }
 0x17c   : > { %v417_v21 = vpop.f32.mrf.mxu1 }
 0x17d   : > { %452 = vst.msk [vmem:[%s1096_s30 + $0x38] sm:$0xff] %vm444_vm0, %v417_v21 }
 0x180   : > { %v438_v22 = vpop.f32.mrf.mxu3 }
 0x181   : > { %459 = vst.msk [vmem:[%s1096_s30 + $0x70] sm:$0xff] %vm444_vm0, %v438_v22 }
 0x188   : > { %v441_v23 = vpop.f32.mrf.mxu3 }
 0x189   : > { %460 = vst.msk [vmem:[%s1096_s30 + $0x78] sm:$0xff] %vm444_vm0, %v441_v23 }
 0x18a PF: > { %p694_p10 = scmp.ge.s32.totalorder %s827_s18, 2  ;;  %s500_s19 = sand.u32 1, %s815_s15  }
 0x18b   : > { %s501_s27 = scalar_lea.sflag [#allocation4], %s500_s19 }
 0x18c   : > { %p690_p7 = pnand %p694_p10, %p911_p11 }
 0x18e   : > { %p691_p8 = pneg %p690_p7 }
 0x190   : > { %810 = dma.done.wait (%p691_p8), %s501_s27, 1024  }
 0x191   : > { %812 = vsyncadd (%p691_p8), %s501_s27, 4294966272  ;;  %p18_p9 = scmp.ge.s32.totalorder %s883_s21, 6   ;;  %s1157_s15 = smov %s819_s16 }
 0x192   : > { %s1158_s16 = smov %s823_s17  ;;  %s1159_s17 = smov %s895_s24 }
 0x193   : > { %s1160_s18 = smov %s883_s21  ;;  %20 = sbr.rel (!%p18_p9) target bundleno = 5 (0x5), region = 89 }
 0x198   :  { %515 = vsyncpa [#allocation3], 1 }
 0x199   :  { %517 = vsyncpa [#allocation3 + $0x1], 1 }
 0x19a   :  { %518 = vsyncpa [#allocation4], 1 }
 0x19b   :  { %520 = vsyncpa [#allocation4 + $0x1], 1 }

</bundles_post_ra>
